<compile_context>
chip_gen: v7x
topology: tpu7x:2x2x1
jax: 0.10.0
libtpu: 0.0.40
codegen_flags: <defaults>
</compile_context>

<pallas_src>
import functools

import jax
import jax.numpy as jnp
from jax.experimental import pallas as pl
from jax.experimental.pallas import tpu as pltpu


_TARGET_BLOCK_IN_BYTES = 12 << 20   # aim ~12 MiB of input per grid step


# --------------------------------------------------------------------------
# Hardware-aware budgets
# --------------------------------------------------------------------------
def _per_core_vmem_bytes() -> int:
    """Per-TensorCore VMEM. v7x is 64 MiB/TC even if info reports chip-level."""
    kind = ""
    try:
        kind = jax.devices()[0].device_kind.lower()
    except Exception:
        pass
    if ("v7" in kind) or ("tpu7" in kind):
        return 64 << 20
    try:
        cap = int(pltpu.get_tpu_info().vmem_capacity_bytes)
        if cap > 0:
            return min(cap, 128 << 20)
    except Exception:
        pass
    # Conservative fallback (assume the smallest, v7x-sized, per-core VMEM).
    return 64 << 20


def _vmem_budgets() -> tuple[int, int]:
    """(tile_budget, vmem_limit_cap) in bytes, per TensorCore."""
    per_core = _per_core_vmem_bytes()
    if per_core >= (96 << 20):
        # 128 MiB parts (v5e / v6e): plenty of headroom -> bigger tiles.
        return 80 << 20, 96 << 20
    # 64 MiB-per-core parts (v7x) or unknown: clamp hard.
    return 30 << 20, 52 << 20


def _pick_lane_chunk(dim: int) -> int | None:
    """Lane-axis chunk for the two-pass kernel (None => single-pass kernel)."""
    if dim < 2048:
        return None
    for c in (2048, 1024, 512):
        if dim % c == 0 and dim // c >= 2:
            return c
    return None


def _pick_row_tile(rows: int, dim: int, x_bytes: int, out_bytes: int,
                   lane_chunk: int | None, tile_budget: int) -> int:
    """Largest multiple-of-8 row tile that fits the VMEM budget and a
    bytes-per-block target; prefers even grid-step counts (v7x 2-TC balance)
    and exact divisors (no masked epilogue block)."""
    rows8 = -(-rows // 8) * 8

    # Per-row VMEM cost: double-buffered input + output blocks plus the f32
    # working set (full-tile for the single-pass kernel, one lane chunk for
    # the chunked kernel) plus the [row,1] f32 accumulator / inv-rms.
    if lane_chunk is None:
        per_row = dim * (2 * x_bytes + 2 * out_bytes + 8) + 8
    else:
        per_row = dim * (2 * x_bytes + 2 * out_bytes) + 12 * lane_chunk + 8

    budget_rows = max(8, (tile_budget // per_row) // 8 * 8)
    # Bytes-per-block target: keeps the ~0.35 us per-step grid overhead well
    # under 5% even at v7x HBM bandwidth, without an arbitrary row cap that
    # starves small-dim configs.
    target_rows = max(256, (_TARGET_BLOCK_IN_BYTES // max(1, dim * x_bytes)) // 8 * 8)

    tile = min(budget_rows, target_rows, rows8)
    tile = max(8, tile)

    # Keep >= 4 grid steps when tiles are large (pipeline overlap; 2 TCs on
    # v7x) as long as the tile stays big enough to amortize per-step cost.
    while tile >= 512 and -(-rows // tile) < 4:
        tile = max(8, (tile // 2) // 8 * 8)

    # Prefer an even number of grid steps (v7x shards the parallel axis over
    # two TensorCores; harmless on single-core chips), then exact divisors
    # (avoids a masked partial last block), then the tallest tile.
    best, best_key = tile, (-1, -1, -1)
    lo = max(8, (tile * 3 // 4) // 8 * 8)
    for t in range(tile, lo - 1, -8):
        g = -(-rows // t)
        key = (1 if (g % 2 == 0 or g == 1) else 0,
               1 if rows % t == 0 else 0,
               t)
        if key > best_key:
            best_key, best = key, t
    return best


# --------------------------------------------------------------------------
# Kernels
# --------------------------------------------------------------------------
def _rmsnorm_kernel(x_ref, w_ref, o_ref, *, eps: float):
    # torch: weight * (x.float() * rsqrt(mean(x.float()**2, -1, keepdim) + eps)).type_as(x)
    x = x_ref[...].astype(jnp.float32)                          # x.float()
    ms = jnp.mean(x * x, axis=-1, keepdims=True)                # XLU reduce
    normed = (x * jax.lax.rsqrt(ms + eps)).astype(x_ref.dtype)  # .type_as(x)
    # weight was cast to the output dtype once in the wrapper.
    o_ref[...] = (w_ref[...] * normed).astype(o_ref.dtype)


def _rmsnorm_kernel_chunked(x_ref, w_ref, o_ref, *, eps: float,
                            dim: int, lane_chunk: int):
    """Two-pass variant for large `dim`: keeps the f32 working set to one
    lane chunk so bigger row tiles fit VMEM (v7x 64 MiB per core)."""
    n_chunks = dim // lane_chunk
    rows = x_ref.shape[0]
    inv_dim = 1.0 / dim

    # Pass 1: sum of squares over lane chunks -> [rows, 1] f32 accumulator.
    def _reduce(c, acc):
        start = pl.multiple_of(c * lane_chunk, lane_chunk)
        xc = x_ref[:, pl.ds(start, lane_chunk)].astype(jnp.float32)
        return acc + jnp.sum(xc * xc, axis=-1, keepdims=True)

    ssq = jax.lax.fori_loop(0, n_chunks, _reduce,
                            jnp.zeros((rows, 1), jnp.float32))
    inv_rms = jax.lax.rsqrt(ssq * inv_dim + eps)                # [rows, 1] f32

    # Pass 2: normalize, cast back to x.dtype, apply weight, store per chunk.
    @pl.loop(0, n_chunks)
    def _(c):
        start = pl.multiple_of(c * lane_chunk, lane_chunk)
        xc = x_ref[:, pl.ds(start, lane_chunk)].astype(jnp.float32)
        normed = (xc * inv_rms).astype(x_ref.dtype)             # .type_as(x)
        o_ref[:, pl.ds(start, lane_chunk)] = (
            w_ref[:, pl.ds(start, lane_chunk)] * normed
        ).astype(o_ref.dtype)


# --------------------------------------------------------------------------
# Wrapper
# --------------------------------------------------------------------------
def rmsnorm(x: jax.Array, weight: jax.Array, eps: float = 1e-6,
            row_tile: int | None = None,
            out_dtype: jnp.dtype | None = None) -> jax.Array:
    """RMSNorm over the last axis of x with learnable `weight` (shape [dim]).

    `out_dtype=None` follows torch promotion (weight * normed.type_as(x));
    pass `out_dtype=x.dtype` to halve the write stream for bf16 activations.
    """
    orig_shape = x.shape
    dim = orig_shape[-1]
    assert weight.shape == (dim,), (weight.shape, dim)

    if out_dtype is None:
        out_dtype = jnp.promote_types(weight.dtype, x.dtype)

    x2 = x.reshape(-1, dim)
    rows = x2.shape[0]

    x_bytes = jnp.dtype(x.dtype).itemsize
    out_bytes = jnp.dtype(out_dtype).itemsize

    lane_chunk = _pick_lane_chunk(dim)
    tile_budget, vmem_limit_cap = _vmem_budgets()

    if row_tile is None:
        row_tile = _pick_row_tile(rows, dim, x_bytes, out_bytes,
                                  lane_chunk, tile_budget)
    row_tile = max(8, (int(row_tile) // 8) * 8)

    # No row padding / output slicing: partial last block is masked by Pallas.
    grid_rows = pl.cdiv(rows, row_tile)

    # Hoist the weight cast out of the per-tile path: cast once here.
    w2 = weight.astype(out_dtype).reshape(1, dim)

    if lane_chunk is None:
        per_row = dim * (2 * x_bytes + 2 * out_bytes + 8) + 8
        kernel = functools.partial(_rmsnorm_kernel, eps=float(eps))
    else:
        per_row = dim * (2 * x_bytes + 2 * out_bytes) + 12 * lane_chunk + 8
        kernel = functools.partial(_rmsnorm_kernel_chunked, eps=float(eps),
                                   dim=dim, lane_chunk=lane_chunk)

    # Explicit VMEM budget (clamped per-core) so enlarged blocks are neither
    # rejected by the scoped-VMEM default nor oversubscribe v7x's 64 MiB/TC.
    needed = row_tile * per_row + 2 * dim * out_bytes + (2 << 20)
    vmem_limit = int(min(max(needed, 32 << 20), vmem_limit_cap))

    out = pl.pallas_call(
        kernel,
        out_shape=jax.ShapeDtypeStruct((rows, dim), out_dtype),
        grid_spec=pltpu.PrefetchScalarGridSpec(
            num_scalar_prefetch=0,
            grid=(grid_rows,),
            in_specs=[
                pl.BlockSpec((row_tile, dim), lambda i: (i, 0)),   # x tile
                pl.BlockSpec((1, dim), lambda i: (0, 0)),          # weight (resident)
            ],
            out_specs=pl.BlockSpec((row_tile, dim), lambda i: (i, 0)),
        ),
        compiler_params=pltpu.CompilerParams(
            dimension_semantics=("parallel",),
            vmem_limit_bytes=vmem_limit,
        ),
    )(x2, w2)

    return out.reshape(orig_shape[:-1] + (dim,)).astype(out_dtype).reshape(orig_shape) \
        if out.shape != orig_shape else out


def rmsnorm_ref(x, weight, eps=1e-6):
    xf = x.astype(jnp.float32)
    ms = jnp.mean(xf * xf, axis=-1, keepdims=True)
    normed = (xf * jax.lax.rsqrt(ms + eps)).astype(x.dtype)
    return weight * normed


if __name__ == "__main__":
    key = jax.random.PRNGKey(0)
    k1, k2, k3, k4 = jax.random.split(key, 4)

    # 1) Small shape consistent with the module: (batch, seq, dim).
    batch, seq, dim = 2, 8, 32
    x = jax.random.normal(k1, (batch, seq, dim), dtype=jnp.float32)
    weight = jnp.ones((dim,), dtype=jnp.float32)   # nn.Parameter(torch.ones(dim))
    out = jax.block_until_ready(rmsnorm(x, weight, eps=1e-6))
    ref = rmsnorm_ref(x, weight, eps=1e-6)
    assert out.shape == x.shape and out.dtype == ref.dtype
    assert jnp.allclose(out, ref, atol=1e-5, rtol=1e-5), "mismatch vs reference"

    # 2) Ragged rows (15, not a multiple of 8): exercises the masked partial
    #    last block (no wrapper pad/slice anymore).
    x3 = jax.random.normal(k2, (3, 5, dim), dtype=jnp.float32)
    out3 = jax.block_until_ready(rmsnorm(x3, weight, eps=1e-6))
    ref3 = rmsnorm_ref(x3, weight, eps=1e-6)
    assert out3.shape == x3.shape
    assert jnp.allclose(out3, ref3, atol=1e-5, rtol=1e-5), "ragged mismatch"

    # 3) Large dim: exercises the lane-chunked two-pass kernel.
    dim_big = 2048
    xb = jax.random.normal(k3, (2, 8, dim_big), dtype=jnp.float32)
    wb = (1.0 + 0.01 * jax.random.normal(k4, (dim_big,))).astype(jnp.float32)
    outb = jax.block_until_ready(rmsnorm(xb, wb, eps=1e-6))
    refb = rmsnorm_ref(xb, wb, eps=1e-6)
    assert outb.shape == xb.shape
    assert jnp.allclose(outb, refb, atol=1e-4, rtol=1e-4), "chunked mismatch"

    # 4) bf16 activations with f32 weight: torch promotion -> f32 output.
    xh = jax.random.normal(k2, (2, 8, dim), dtype=jnp.bfloat16)
    outh = jax.block_until_ready(rmsnorm(xh, weight, eps=1e-6))
    refh = rmsnorm_ref(xh, weight, eps=1e-6)
    assert outh.dtype == refh.dtype == jnp.float32
    assert jnp.allclose(outh, refh, atol=1e-2, rtol=1e-2), "bf16 mismatch"

    print("KERNEL_OK")
</pallas_src>

<mosaic_0001>
module attributes {stable_mosaic.version = 11 : i64} {
  func.func @_rmsnorm_kernel(%arg0: i32, %arg1: memref<16x32xf32, #tpu.memory_space<vmem>>, %arg2: memref<1x32xf32, #tpu.memory_space<vmem>>, %arg3: memref<16x32xf32, #tpu.memory_space<vmem>>) attributes {dimension_semantics = [#tpu.dimension_semantics<parallel>], iteration_bounds = array<i64: 1>, scalar_prefetch = 0 : i64, scratch_operands = 0 : i64, tpu.core_type = #tpu.core_type<tc>, window_params = [{transform_indices = @transform_0, window_bounds = array<i64: 16, 32>}, {pipeline_mode = #tpu.pipeline_mode<synchronous>, transform_indices = @transform_1, window_bounds = array<i64: 1, 32>}, {transform_indices = @transform_2, window_bounds = array<i64: 16, 32>}]} {
    %c0 = arith.constant 0 : index
    %c0_0 = arith.constant 0 : index
    %0 = vector.load %arg1[%c0, %c0_0] : memref<16x32xf32, #tpu.memory_space<vmem>>, vector<16x32xf32>
    %1 = arith.mulf %0, %0 : vector<16x32xf32>
    %cst = arith.constant dense<0.000000e+00> : vector<16xf32>
    %2 = vector.multi_reduction <add>, %1, %cst [1] : vector<16x32xf32> to vector<16xf32>
    %3 = vector.shape_cast %2 : vector<16xf32> to vector<16x1xf32>
    %cst_1 = arith.constant 3.200000e+01 : f32
    %4 = vector.broadcast %cst_1 : f32 to vector<16x1xf32>
    %5 = arith.divf %3, %4 : vector<16x1xf32>
    %cst_2 = arith.constant 9.99999997E-7 : f32
    %6 = vector.broadcast %cst_2 : f32 to vector<16x1xf32>
    %7 = arith.addf %5, %6 : vector<16x1xf32>
    %8 = math.rsqrt %7 : vector<16x1xf32>
    %9 = vector.broadcast %8 : vector<16x1xf32> to vector<16x32xf32>
    %10 = arith.mulf %0, %9 : vector<16x32xf32>
    %c0_3 = arith.constant 0 : index
    %c0_4 = arith.constant 0 : index
    %11 = vector.load %arg2[%c0_3, %c0_4] : memref<1x32xf32, #tpu.memory_space<vmem>>, vector<1x32xf32>
    %12 = vector.broadcast %11 : vector<1x32xf32> to vector<16x32xf32>
    %13 = arith.mulf %12, %10 : vector<16x32xf32>
    %c0_5 = arith.constant 0 : index
    %c0_6 = arith.constant 0 : index
    %14 = vector.load %arg3[%c0_5, %c0_6] : memref<16x32xf32, #tpu.memory_space<vmem>>, vector<16x32xf32>
    tpu.vector_store %arg3[%c0_5, %c0_6], %13 {strides = array<i32>} : memref<16x32xf32, #tpu.memory_space<vmem>>, vector<16x32xf32>,
    return
  }
  func.func @transform_0(%arg0: i32) -> (i32, i32) {
    %c0_i32 = arith.constant 0 : i32
    %c0_i32_0 = arith.constant 0 : i32
    return %arg0, %c0_i32 : i32, i32
  }
  func.func @transform_1(%arg0: i32) -> (i32, i32) {
    %c0_i32 = arith.constant 0 : i32
    %c0_i32_0 = arith.constant 0 : i32
    %c0_i32_1 = arith.constant 0 : i32
    return %c0_i32, %c0_i32_0 : i32, i32
  }
  func.func @transform_2(%arg0: i32) -> (i32, i32) {
    %c0_i32 = arith.constant 0 : i32
    %c0_i32_0 = arith.constant 0 : i32
    return %arg0, %c0_i32 : i32, i32
  }
}

</mosaic_0001>

<bundles_post_ra>
// kernel: tpu_custom_call.1
= control target key start
LH: loop header
LB: loop body
LE: loop exit
PB: predicated region body
PF: predicated region fallthrough
CT: control target
= control target key end

     0   :  { %7 = vsyncpa [#allocation3], 0  ;;  %s187_s0 = inlined_call_operand.hbm [shape: f32[16,32], index: 0, kind: input, shape index: {}]   ;;  %s188_s1 = inlined_call_operand.vmem [shape: f32[1,32], index: 1, kind: input, shape index: {}]   ;;  %s189_s2 = inlined_call_operand.hbm [shape: f32[16,32], index: 2, kind: output, shape index: {}]  }
   0x1   :  { %8 = vsyncpa [#allocation4], 0  ;;  %s131_s9 = smov [#allocation2]   ;;  %s83_s13 = scalar_lea.hbm %s187_s0, 256 }
   0x2   :  { %s14_s10 = sshll.u32 %s131_s9, 4  ;;  %p84_p0 = scmp.ne.s32.totalorder %s187_s0, %s83_s13  ;;  %s15_s10 = int_to_ptr.vmem [resolvable:$true] %s14_s10 }
   0x3   :  { %p87_p1 = scmp.lt.u32.totalorder %s83_s13, %s187_s0 }
   0x5   :  { %p89_p2 = pnand %p87_p1, %p84_p0 }
   0x7   :  { %92 = shalt.err (!%p89_p2)
}
   0x8   :  { %s93_s18 = scalar_lea.vmem %s15_s10, 256  ;;  %p98_p4 = scmp.lt.s32.totalorder %s15_s10, %s15_s10 }
   0x9   :  { %p94_p3 = scmp.ne.s32.totalorder %s15_s10, %s93_s18  ;;  %p99_p5 = scmp.lt.s32.totalorder %s93_s18, %s93_s18 }
   0xb   :  { %p100_p6 = por %p99_p5, %p98_p4 }
   0xd   :  { %p101_p7 = pnand %p100_p6, %p94_p3 }
   0xf   :  { %104 = shalt.err (!%p101_p7)
}
  0x10   :  { %s132_s19 = smov 128   ;;  %s133_s20 = smov 8  }
  0x11   :  { %20 = dma.hbm_to_vmem [thread:$0]  %s187_s0, 256, %s15_s10, [#allocation3], %s132_s19, %s132_s19, %s133_s20  }
  0x12   :  { %127 = dma.done.wait [#allocation3], 256  }
  0x13   :  { %128 = vsyncadd [#allocation3], 4294967040  ;;  %v26_v0 = vld [vmem:[#allocation2] sm:$0xff]  ;;  %vm30_vm0 = vcmask 261120   ;;  %v27_v1 = vld [vmem:[#allocation2 + $0x8] sm:$0xff]  ;;  %s134_s24 = smov [#allocation5]  }
  0x14   :  { %v28_v2 = vmul.f32 %v26_v0, %v26_v0  ;;  %v29_v3 = vmul.f32 %v27_v1, %v27_v1  ;;  %v74_v13 = vld [vmem:[%s188_s1] ss:$0 sm:$0xff]  ;;  %s62_s25 = sshll.u32 %s134_s24, 4  ;;  %s63_s25 = int_to_ptr.vmem [resolvable:$true] %s62_s25 }
  0x15   :  { %s105_s26 = scalar_lea.vmem %s63_s25, 256  ;;  %p110_p9 = scmp.lt.s32.totalorder %s63_s25, %s63_s25 }
  0x16   :  { %v31_v4 = vsel %vm30_vm0, %v28_v2, 0.0  ;;  %v34_v5 = vsel %vm30_vm0, %v29_v3, 0.0  ;;  %p106_p8 = scmp.ne.s32.totalorder %s63_s25, %s105_s26  ;;  %p111_p10 = scmp.lt.s32.totalorder %s105_s26, %s105_s26 }
  0x17   :  { %32 = vadd.xlane.f32.xlu0 %v31_v4 }
  0x18   :  { %p112_p11 = por %p111_p10, %p110_p9 }
  0x1a   :  { %p113_p12 = pnand %p112_p11, %p106_p8 }
  0x1b   :  { %35 = vadd.xlane.f32.xlu0 %v34_v5 }
  0xa4   :  { %v33_v6 = vpop.xlane.xlu0 %32 }
  0xa5   :  { %v38_v7 = vmul.f32 0.03125, %v33_v6 }
  0xa7   :  { %v40_v8 = vadd.f32 1e-06, %v38_v7 }
  0xa8   :  { %v36_v9 = vpop.xlane.xlu0 %35 }
  0xa9   :  { %79 = vrsqrt.f32 %v40_v8  ;;  %v39_v10 = vmul.f32 0.03125, %v36_v9 }
  0xab   :  { %v41_v11 = vadd.f32 1e-06, %v39_v10 }
  0xad   :  { %81 = vrsqrt.f32 %v41_v11 }
  0xb3   :  { %v80_v12 = vpop.eup %79 }
  0xb4   :  { %v44_v14 = vmul.f32 %v80_v12, %v26_v0 }
  0xb6   :  { %v53_v15 = vmul.f32 %v74_v13, %v44_v14 }
  0xb7   :  { %v82_v16 = vpop.eup %81 }
  0xb8   :  { %v45_v17 = vmul.f32 %v82_v16, %v27_v1  ;;  %55 = vst.msk [vmem:[#allocation5] sm:$0xff] %vm30_vm0, %v53_v15 }
  0xba   :  { %v54_v18 = vmul.f32 %v74_v13, %v45_v17 }
  0xbc   :  { %56 = vst.msk [vmem:[#allocation5 + $0x8] sm:$0xff] %vm30_vm0, %v54_v18 }
  0xbd   :  { %116 = shalt.err (!%p113_p12)
}
  0xbe   :  { %s117_s28 = scalar_lea.hbm %s189_s2, 256 }
  0xbf   :  { %p118_p13 = scmp.ne.s32.totalorder %s189_s2, %s117_s28  ;;  %p121_p0 = scmp.lt.u32.totalorder %s117_s28, %s189_s2 }
  0xc1   :  { %p123_p1 = pnand %p121_p0, %p118_p13 }
  0xc3   :  { %126 = shalt.err (!%p123_p1)
}
  0xc4   :  { %68 = dma.vmem_to_hbm [thread:$0]  %s63_s25, 256, %s189_s2, [#allocation4], %s132_s19, %s132_s19, %s133_s20  }
  0xc5   :  { %129 = dma.done.wait [#allocation4], 256  }
  0xc6   :  { %130 = vsyncadd [#allocation4], 4294967040 }
  0xc7   :  { %72 = vsyncpa [#allocation3], 1 }
  0xc8   :  { %73 = vsyncpa [#allocation4], 1 }

</bundles_post_ra>
